<compile_context>
chip_gen: v7x
topology: tpu7x:2x2x1
jax: 0.10.0
libtpu: 0.0.40
codegen_flags: <defaults>
</compile_context>

<pallas_src>
import functools

import jax
import jax.numpy as jnp
from jax.experimental import pallas as pl
from jax.experimental.pallas import tpu as pltpu

_LN2 = 0.6931471805599453
_LANE_WIDTHS = (1024, 512, 256, 128)
_MIN_ROW_TILE = 8


def _vmem_capacity_bytes() -> int:
    """Physical per-core VMEM, with a conservative (v7x, 64 MiB) fallback."""
    try:
        cap = getattr(pltpu.get_tpu_info(), "vmem_capacity_bytes", None)
        if cap:
            return int(cap)
    except Exception:
        pass
    return 64 * 1024 * 1024


def _block_config(vmem_bytes: int):
    """Device-aware (per-input block bytes, scoped vmem limit)."""
    if vmem_bytes >= 96 * 1024 * 1024:
        # v5e / v6e: 128 MiB physical VMEM -> big blocks, raised scoped limit.
        # Residency: 2 inputs x 2 buffers x 16 MiB = 64 MiB (< 80 MiB limit).
        return 16 * 1024 * 1024, 80 * 1024 * 1024
    # v7x: only 64 MiB physical VMEM -> 2 x 2 x 4 MiB = 16 MiB resident,
    # comfortably under a 32 MiB scoped limit with headroom for scratch.
    return 4 * 1024 * 1024, 32 * 1024 * 1024


def _bell_lcosh_kernel(p_ref, y_ref, out_ref, *, n_valid_rows, ragged):
    i = pl.program_id(0)

    # Per-element cast to f32 inside the kernel (inputs stay native dtype in HBM).
    d = p_ref[...].astype(jnp.float32) - y_ref[...].astype(jnp.float32)

    if ragged:
        # Mask out-of-range rows of the final partial block BEFORE any
        # transcendental. Elsewhere the predicate is all-True (cheap VPU filler).
        br = p_ref.shape[0]
        row_ids = i * br + jax.lax.broadcasted_iota(jnp.int32, d.shape, 0)
        d = jnp.where(row_ids < n_valid_rows, d, 0.0)

    # Bell term: 300 * (1 - exp(-d^2 / 162))                  (== 0   at d == 0)
    bell = 300.0 * (1.0 - jnp.exp(d * d * (-1.0 / 162.0)))
    # LogCosh term + ln2 (stable): |d| + log1p(exp(-2|d|))    (== ln2 at d == 0)
    # The "- ln2" per element is hoisted to the wrapper.
    a = jnp.abs(d)
    lcosh_p = a + jnp.log1p(jnp.exp(-2.0 * a))

    # Lane-dense per-block partial sum; no cross-grid accumulator needed.
    partial = jnp.sum(bell + lcosh_p, axis=0, keepdims=True)     # (1, W)
    out_ref[...] = partial.reshape(1, 1, partial.shape[1])        # (1, 1, W)


def bell_lcosh_loss(p: jax.Array, y: jax.Array) -> jax.Array:
    """Equivalent to BellLCosh()(p, y) from the PyTorch spec. Returns f32 scalar."""
    assert p.shape == y.shape, "BellLCosh expects matching shapes"
    n_true = p.size
    assert n_true > 0

    pf = jnp.ravel(p)
    yf = jnp.ravel(y)
    # NOTE(perf): if the input's minor dim is not lane-aligned (e.g. NCHW with
    # W=16) this flatten may force an XLA relayout copy feeding the kernel;
    # feed already-flattened / lane-aligned tensors upstream to avoid it.

    # Pick the widest lane-dense row width that divides N (no padding needed).
    w = None
    for cand in _LANE_WIDTHS:
        if n_true % cand == 0:
            w = cand
            break
    if w is None:
        # Rare ragged fallback: zero-pad to a multiple of 128. Padded elements
        # have d == 0 and their +ln2 contribution is cancelled exactly below.
        w = 128
        pad = (-n_true) % w
        pf = jnp.pad(pf, (0, pad))
        yf = jnp.pad(yf, (0, pad))

    rows = pf.size // w
    pf = pf.reshape(rows, w)
    yf = yf.reshape(rows, w)

    itemsize = max(pf.dtype.itemsize, yf.dtype.itemsize)
    target_block_bytes, vmem_limit = _block_config(_vmem_capacity_bytes())

    if rows <= 2 * _MIN_ROW_TILE:
        # Tiny input: a single full-extent block (pipelining can't help here).
        br = rows
        grid = 1
    else:
        # Device-sized row tile...
        tm = max(
            _MIN_ROW_TILE,
            (target_block_bytes // (w * itemsize)) // _MIN_ROW_TILE * _MIN_ROW_TILE,
        )
        # ...but force >= 2 evenly sized, pipelined steps so DMA overlaps
        # compute and both v7x TensorCores can be sharded onto the grid.
        steps = max(2, pl.cdiv(rows, tm))
        br = min(
            tm,
            max(_MIN_ROW_TILE,
                pl.cdiv(pl.cdiv(rows, steps), _MIN_ROW_TILE) * _MIN_ROW_TILE),
        )
        grid = pl.cdiv(rows, br)
    ragged = (grid * br) != rows

    # Total processed elements (valid + zero-padded + row-masked). Each one
    # carries an un-subtracted "+ln2" that is removed once below.
    total_elems = grid * br * w

    cost = pl.CostEstimate(
        flops=12 * total_elems,
        transcendentals=3 * total_elems,
        bytes_accessed=(pf.size * pf.dtype.itemsize
                        + yf.size * yf.dtype.itemsize
                        + grid * w * 4),
    )

    partials = pl.pallas_call(
        functools.partial(_bell_lcosh_kernel, n_valid_rows=rows, ragged=ragged),
        out_shape=jax.ShapeDtypeStruct((grid, 1, w), jnp.float32),
        grid_spec=pltpu.PrefetchScalarGridSpec(
            num_scalar_prefetch=0,
            grid=(grid,),
            in_specs=[
                pl.BlockSpec((br, w), lambda i: (i, 0)),
                pl.BlockSpec((br, w), lambda i: (i, 0)),
            ],
            out_specs=pl.BlockSpec((1, 1, w), lambda i: (i, 0, 0)),
        ),
        compiler_params=pltpu.CompilerParams(
            # Independent per-block partial sums -> true parallel axis.
            dimension_semantics=("parallel",),
            vmem_limit_bytes=vmem_limit,
        ),
        cost_estimate=cost,
    )(pf, yf)

    total = jnp.sum(partials)
    # Hoisted "- ln2" per processed element (cancels masked/padded elements
    # exactly and removes one VALU op per element from the hot loop).
    return (total - jnp.float32(_LN2 * total_elems)) * jnp.float32(1.0 / n_true)


def _reference(p, y):
    p32 = p.astype(jnp.float32)
    y32 = y.astype(jnp.float32)
    bell = jnp.mean(300.0 * (1.0 - jnp.exp(-((y32 - p32) ** 2) / 162.0)))
    lcosh = jnp.mean(jnp.log(jnp.cosh(p32 - y32)))
    return bell + lcosh


if __name__ == "__main__":
    key = jax.random.PRNGKey(0)
    k1, k2, k3, k4, k5, k6 = jax.random.split(key, 6)

    # 1) Small NCHW-shaped example (lane-aligned element count: no padding path).
    p = jax.random.normal(k1, (2, 4, 16, 16), dtype=jnp.float32)
    y = jax.random.normal(k2, (2, 4, 16, 16), dtype=jnp.float32)
    loss = bell_lcosh_loss(p, y)
    jax.block_until_ready(loss)
    ref = _reference(p, y)
    assert jnp.allclose(loss, ref, rtol=1e-4, atol=1e-5), (loss, ref)

    # 2) Ragged element count (exercises the minimal zero-pad fallback path).
    p2 = jax.random.normal(k3, (3, 5, 7), dtype=jnp.float32)
    y2 = jax.random.normal(k4, (3, 5, 7), dtype=jnp.float32)
    loss2 = bell_lcosh_loss(p2, y2)
    jax.block_until_ready(loss2)
    ref2 = _reference(p2, y2)
    assert jnp.allclose(loss2, ref2, rtol=1e-4, atol=1e-5), (loss2, ref2)

    # 3) Mid-size bf16 input (exercises >=2-step pipelined grid, ragged row
    #    masking, and the in-kernel native-dtype -> f32 cast path).
    p3 = jax.random.normal(k5, (4, 3, 40, 128), dtype=jnp.bfloat16)
    y3 = jax.random.normal(k6, (4, 3, 40, 128), dtype=jnp.bfloat16)
    loss3 = bell_lcosh_loss(p3, y3)
    jax.block_until_ready(loss3)
    ref3 = _reference(p3, y3)
    assert jnp.allclose(loss3, ref3, rtol=1e-3, atol=1e-4), (loss3, ref3)

    print("KERNEL_OK")
</pallas_src>

<mosaic_0001>
module attributes {stable_mosaic.version = 11 : i64} {
  func.func @_bell_lcosh_kernel(%arg0: i32, %arg1: memref<2x1024xf32, #tpu.memory_space<vmem>>, %arg2: memref<2x1024xf32, #tpu.memory_space<vmem>>, %arg3: memref<1x1x1024xf32, #tpu.memory_space<vmem>>) attributes {dimension_semantics = [#tpu.dimension_semantics<parallel>], iteration_bounds = array<i64: 1>, scalar_prefetch = 0 : i64, scratch_operands = 0 : i64, tpu.core_type = #tpu.core_type<tc>, window_params = [{transform_indices = @transform_0, window_bounds = array<i64: 2, 1024>}, {transform_indices = @transform_1, window_bounds = array<i64: 2, 1024>}, {transform_indices = @transform_2, window_bounds = array<i64: 1, 1, 1024>}]} {
    %c0 = arith.constant 0 : index
    %c0_0 = arith.constant 0 : index
    %0 = vector.load %arg1[%c0, %c0_0] : memref<2x1024xf32, #tpu.memory_space<vmem>>, vector<2x1024xf32>
    %c0_1 = arith.constant 0 : index
    %c0_2 = arith.constant 0 : index
    %1 = vector.load %arg2[%c0_1, %c0_2] : memref<2x1024xf32, #tpu.memory_space<vmem>>, vector<2x1024xf32>
    %2 = arith.subf %0, %1 : vector<2x1024xf32>
    %3 = arith.mulf %2, %2 : vector<2x1024xf32>
    %cst = arith.constant -0.00617283955 : f32
    %4 = vector.broadcast %cst : f32 to vector<2x1024xf32>
    %5 = arith.mulf %3, %4 : vector<2x1024xf32>
    %6 = math.exp %5 : vector<2x1024xf32>
    %cst_3 = arith.constant 1.000000e+00 : f32
    %7 = vector.broadcast %cst_3 : f32 to vector<2x1024xf32>
    %8 = arith.subf %7, %6 : vector<2x1024xf32>
    %cst_4 = arith.constant 3.000000e+02 : f32
    %9 = vector.broadcast %cst_4 : f32 to vector<2x1024xf32>
    %10 = arith.mulf %9, %8 : vector<2x1024xf32>
    %11 = math.absf %2 : vector<2x1024xf32>
    %cst_5 = arith.constant -2.000000e+00 : f32
    %12 = vector.broadcast %cst_5 : f32 to vector<2x1024xf32>
    %13 = arith.mulf %12, %11 : vector<2x1024xf32>
    %14 = math.exp %13 : vector<2x1024xf32>
    %15 = math.log1p %14 : vector<2x1024xf32>
    %16 = arith.addf %11, %15 : vector<2x1024xf32>
    %17 = arith.addf %10, %16 : vector<2x1024xf32>
    %cst_6 = arith.constant dense<0.000000e+00> : vector<1024xf32>
    %18 = vector.multi_reduction <add>, %17, %cst_6 [0] : vector<2x1024xf32> to vector<1024xf32>
    %19 = vector.shape_cast %18 : vector<1024xf32> to vector<1x1024xf32>
    %20 = vector.shape_cast %19 : vector<1x1024xf32> to vector<1x1x1024xf32>
    %c0_7 = arith.constant 0 : index
    %c0_8 = arith.constant 0 : index
    %c0_9 = arith.constant 0 : index
    %21 = vector.load %arg3[%c0_7, %c0_8, %c0_9] : memref<1x1x1024xf32, #tpu.memory_space<vmem>>, vector<1x1x1024xf32>
    tpu.vector_store %arg3[%c0_7, %c0_8, %c0_9], %20 {strides = array<i32>} : memref<1x1x1024xf32, #tpu.memory_space<vmem>>, vector<1x1x1024xf32>,
    return
  }
  func.func @transform_0(%arg0: i32) -> (i32, i32) {
    %c0_i32 = arith.constant 0 : i32
    %c0_i32_0 = arith.constant 0 : i32
    return %arg0, %c0_i32 : i32, i32
  }
  func.func @transform_1(%arg0: i32) -> (i32, i32) {
    %c0_i32 = arith.constant 0 : i32
    %c0_i32_0 = arith.constant 0 : i32
    return %arg0, %c0_i32 : i32, i32
  }
  func.func @transform_2(%arg0: i32) -> (i32, i32, i32) {
    %c0_i32 = arith.constant 0 : i32
    %c0_i32_0 = arith.constant 0 : i32
    %c0_i32_1 = arith.constant 0 : i32
    return %arg0, %c0_i32, %c0_i32_0 : i32, i32, i32
  }
}

</mosaic_0001>

<bundles_post_ra>
// kernel: tpu_custom_call.1
= control target key start
LH: loop header
LB: loop body
LE: loop exit
PB: predicated region body
PF: predicated region fallthrough
CT: control target
= control target key end

     0   :  { %7 = vsyncpa [#allocation3], 0  ;;  %s417_s0 = inlined_call_operand.hbm [shape: f32[2,1024], index: 0, kind: input, shape index: {}]   ;;  %s418_s1 = inlined_call_operand.hbm [shape: f32[2,1024], index: 1, kind: input, shape index: {}]   ;;  %s419_s2 = inlined_call_operand.hbm [shape: f32[1,1,1024], index: 2, kind: output, shape index: {}]  }
   0x1   :  { %8 = vsyncpa [#allocation6], 0 }
   0x2   :  { %9 = vsyncpa [#allocation4], 0  ;;  %s349_s9 = smov [#allocation2]   ;;  %s350_s11 = smov [#allocation5]  }
   0x3   :  { %s16_s10 = sshll.u32 %s349_s9, 4  ;;  %s26_s12 = sshll.u32 %s350_s11, 4  ;;  %s17_s10 = int_to_ptr.vmem [resolvable:$true] %s16_s10  ;;  %s27_s12 = int_to_ptr.vmem [resolvable:$true] %s26_s12 }
   0x4   :  { %s277_s15 = scalar_lea.hbm %s417_s0, 256 }
   0x5   :  { %p278_p0 = scmp.ne.s32.totalorder %s417_s0, %s277_s15  ;;  %p281_p1 = scmp.lt.u32.totalorder %s277_s15, %s417_s0 }
   0x7   :  { %p283_p2 = pnand %p281_p1, %p278_p0 }
   0x9   :  { %286 = shalt.err (!%p283_p2)
}
   0xa   :  { %s287_s20 = scalar_lea.vmem %s17_s10, 256  ;;  %p292_p4 = scmp.lt.s32.totalorder %s17_s10, %s17_s10 }
   0xb   :  { %p288_p3 = scmp.ne.s32.totalorder %s17_s10, %s287_s20  ;;  %p293_p5 = scmp.lt.s32.totalorder %s287_s20, %s287_s20 }
   0xd   :  { %p294_p6 = por %p293_p5, %p292_p4 }
   0xf   :  { %p295_p7 = pnand %p294_p6, %p288_p3 }
  0x11   :  { %298 = shalt.err (!%p295_p7)
}
  0x12   :  { %19 = dma.hbm_to_vmem [thread:$0]  %s417_s0, 256, %s17_s10, [#allocation3]  }
  0x13   :  { %s299_s25 = scalar_lea.hbm %s418_s1, 256 }
  0x14   :  { %p300_p8 = scmp.ne.s32.totalorder %s418_s1, %s299_s25  ;;  %p303_p9 = scmp.lt.u32.totalorder %s299_s25, %s418_s1 }
  0x16   :  { %p305_p10 = pnand %p303_p9, %p300_p8 }
  0x18   :  { %308 = shalt.err (!%p305_p10)
}
  0x19   :  { %s309_s30 = scalar_lea.vmem %s27_s12, 256  ;;  %p314_p12 = scmp.lt.s32.totalorder %s27_s12, %s27_s12 }
  0x1a   :  { %p310_p11 = scmp.ne.s32.totalorder %s27_s12, %s309_s30  ;;  %p315_p13 = scmp.lt.s32.totalorder %s309_s30, %s309_s30 }
  0x1c   :  { %p316_p0 = por %p315_p13, %p314_p12 }
  0x1e   :  { %p317_p1 = pnand %p316_p0, %p310_p11 }
  0x20   :  { %320 = shalt.err (!%p317_p1)
}
  0x21   :  { %29 = dma.hbm_to_vmem [thread:$0]  %s418_s1, 256, %s27_s12, [#allocation6]  }
  0x22   :  { %343 = dma.done.wait [#allocation3], 256  }
  0x23   :  { %344 = vsyncadd [#allocation3], 4294967040 }
  0x24   :  { %345 = dma.done.wait [#allocation6], 256  }
  0x25   :  { %346 = vsyncadd [#allocation6], 4294967040  ;;  %v36_v0 = vld [vmem:[#allocation2] sm:$0xff]  ;;  %v37_v1 = vld [vmem:[#allocation2 + $0x8] sm:$0xff]  ;;  %v351_v29 = vmov 1983009808   ;;  %v90_v31 = vlaneseq }
  0x26   :  { %v38_v2 = vld [vmem:[#allocation5] sm:$0xff]  ;;  %v39_v3 = vld [vmem:[#allocation5 + $0x8] sm:$0xff]  ;;  %v88_v30 = vunpack.c.l.s4 %v351_v29  ;;  %v352_v51 = vmov 1966171168   ;;  %vm128_vm2 = vcmask 1041408   ;;  %s353_s1 = smov [#allocation7]  }
  0x27   :  { %v40_v4 = vsub.f32 %v36_v0, %v38_v2  ;;  %v41_v5 = vsub.f32 %v37_v1, %v39_v3  ;;  %v393_v39 = vshrl.u32 %v90_v31, 7  ;;  %v198_v52 = vunpack.c.l.s4 %v352_v51  ;;  %s250_s4 = sshll.u32 %s353_s1, 4  ;;  %s251_s4 = int_to_ptr.vmem [resolvable:$true] %s250_s4 }
  0x28   :  { %v89_v38 = vunpack.c.0.s8 %v88_v30  ;;  %s321_s5 = scalar_lea.vmem %s251_s4, 128  ;;  %p326_p3 = scmp.lt.s32.totalorder %s251_s4, %s251_s4 }
  0x29   :  { %v54_v6 = vand.u32 2147483647, %v40_v4  ;;  %v55_v7 = vand.u32 2147483647, %v41_v5  ;;  %v42_v10 = vmul.f32 %v40_v4, %v40_v4  ;;  %v43_v12 = vmul.f32 %v41_v5, %v41_v5  ;;  %p322_p2 = scmp.ne.s32.totalorder %s251_s4, %s321_s5  ;;  %p327_p4 = scmp.lt.s32.totalorder %s321_s5, %s321_s5 }
  0x2a   :  { %v92_v48 = vsub.s32 %v89_v38, %v393_v39  ;;  %v199_v61 = vunpack.c.0.s8 %v198_v52 }
  0x2b   :  { %v56_v8 = vmul.f32 -2.0, %v54_v6  ;;  %v57_v9 = vmul.f32 -2.0, %v55_v7  ;;  %v44_v14 = vmul.f32 -0.0061728396, %v42_v10  ;;  %v45_v15 = vmul.f32 -0.0061728396, %v43_v12  ;;  %p328_p5 = por %p327_p4, %p326_p3 }
  0x2d   :  { %v58_v11 = vmul.f32 1.442695, %v56_v8  ;;  %v60_v13 = vmul.f32 1.442695, %v57_v9  ;;  %v46_v16 = vmul.f32 1.442695, %v44_v14  ;;  %p329_p6 = pnand %p328_p5, %p322_p2 }
  0x2e   :  { %v48_v17 = vmul.f32 1.442695, %v45_v15 }
  0x2f   :  { %265 = vpow2.f32 %v58_v11 }
  0x30   :  { %267 = vpow2.f32 %v60_v13 }
  0x31   :  { %269 = vpow2.f32 %v46_v16 }
  0x32   :  { %271 = vpow2.f32 %v48_v17 }
  0x39   :  { %v266_v18 = vpop.eup %265 }
  0x3a   :  { %v268_v19 = vpop.eup %267  ;;  %v62_v20 = vadd.f32 1.0, %v266_v18  ;;  %v65_v22 = vmul.f32 -0.5, %v266_v18  ;;  %v68_v27 = vand.u32 2147483647, %v266_v18 }
  0x3b   :  { %v71_v21 = vadd.f32 1.0, %v268_v19  ;;  %v74_v23 = vmul.f32 -0.5, %v268_v19  ;;  %v270_v24 = vpop.eup %269  ;;  %v77_v32 = vand.u32 2147483647, %v268_v19 }
  0x3c   :  { %273 = vlog2.f32 %v62_v20  ;;  %v66_v25 = vadd.f32 1.0, %v65_v22  ;;  %v272_v26 = vpop.eup %271  ;;  %v50_v33 = vsub.f32 1.0, %v270_v24  ;;  %vm69_vm0 = vcmp.lt.f32.partialorder %v68_v27, 0.0004427343 }
  0x3d   :  { %275 = vlog2.f32 %v71_v21  ;;  %v75_v28 = vadd.f32 1.0, %v74_v23  ;;  %v51_v34 = vsub.f32 1.0, %v272_v26  ;;  %vm78_vm1 = vcmp.lt.f32.partialorder %v77_v32, 0.0004427343 }
  0x3e   :  { %v67_v35 = vmul.f32 %v266_v18, %v66_v25  ;;  %v52_v42 = vmul.f32 300.0, %v50_v33 }
  0x3f   :  { %v76_v37 = vmul.f32 %v268_v19, %v75_v28  ;;  %v53_v44 = vmul.f32 300.0, %v51_v34 }
  0x46   :  { %v274_v36 = vpop.eup %273 }
  0x47   :  { %v276_v40 = vpop.eup %275  ;;  %v64_v41 = vmul.f32 0.6931472, %v274_v36 }
  0x48   :  { %v73_v43 = vmul.f32 0.6931472, %v276_v40 }
  0x49   :  { %v70_v45 = vsel %vm69_vm0, %v67_v35, %v64_v41 }
  0x4a   :  { %v79_v46 = vsel %vm78_vm1, %v76_v37, %v73_v43  ;;  %v80_v47 = vadd.f32 %v70_v45, %v54_v6 }
  0x4b   :  { %v81_v49 = vadd.f32 %v79_v46, %v55_v7 }
  0x4c   :  { %v82_v50 = vadd.f32 %v80_v47, %v52_v42 }
  0x4d   :  { %v83_v53 = vadd.f32 %v81_v49, %v53_v44  ;;  %v202_v49 = vsub.s32 %v199_v61, %v393_v39 }
  0x4e   :  { %v86_v54 = vcombine.high %v82_v50, %v82_v50  ;;  %v93_v55 = vrot.slane %v82_v50, %v92_v48 }
  0x4f   :  { %v103_v56 = vcombine.high %v83_v53, %v83_v53  ;;  %v110_v57 = vrot.slane %v83_v53, %v92_v48 }
  0x50   :  { %v100_v58 = vrot.slane %v86_v54, %v92_v48  ;;  %v101_v59 = vcombine.high %v93_v55, %v93_v55  ;;  %v129_v60 = vsel %vm128_vm2, %v93_v55, 0.0 }
  0x51   :  { %v117_v62 = vrot.slane %v103_v56, %v92_v48  ;;  %v118_v63 = vcombine.high %v110_v57, %v110_v57  ;;  %v130_v0 = vrot.slane %v129_v60, 4  ;;  %v157_v1 = vsel %vm128_vm2, %v110_v57, 0.0 }
  0x52   :  { %v102_v2 = vcombine.high %v100_v58, %v100_v58  ;;  %v136_v3 = vsel %vm128_vm2, %v101_v59, 0.0  ;;  %v143_v4 = vsel %vm128_vm2, %v100_v58, 0.0  ;;  %v158_v5 = vrot.slane %v157_v1, 4 }
  0x53   :  { %v119_v6 = vcombine.high %v117_v62, %v117_v62  ;;  %v131_v7 = vadd.f32 %v130_v0, %v129_v60  ;;  %v137_v8 = vrot.slane %v136_v3, 4  ;;  %v144_v9 = vrot.slane %v143_v4, 4 }
  0x54   :  { %v150_v10 = vsel %vm128_vm2, %v102_v2, 0.0  ;;  %v159_v11 = vadd.f32 %v158_v5, %v157_v1  ;;  %v164_v12 = vsel %vm128_vm2, %v118_v63, 0.0  ;;  %v171_v13 = vsel %vm128_vm2, %v117_v62, 0.0 }
  0x55   :  { %v132_v14 = vrot.slane %v131_v7, 2  ;;  %v138_v15 = vadd.f32 %v137_v8, %v136_v3  ;;  %v145_v16 = vadd.f32 %v144_v9, %v143_v4  ;;  %v151_v17 = vrot.slane %v150_v10, 4 }
  0x56   :  { %v160_v18 = vrot.slane %v159_v11, 2  ;;  %v165_v19 = vrot.slane %v164_v12, 4  ;;  %v172_v20 = vrot.slane %v171_v13, 4  ;;  %v178_v21 = vsel %vm128_vm2, %v119_v6, 0.0 }
  0x57   :  { %v133_v22 = vadd.f32 %v132_v14, %v131_v7  ;;  %v139_v23 = vrot.slane %v138_v15, 2  ;;  %v146_v24 = vrot.slane %v145_v16, 2  ;;  %v152_v25 = vadd.f32 %v151_v17, %v150_v10 }
  0x58   :  { %v161_v26 = vadd.f32 %v160_v18, %v159_v11  ;;  %v166_v27 = vadd.f32 %v165_v19, %v164_v12  ;;  %v173_v28 = vadd.f32 %v172_v20, %v171_v13  ;;  %v179_v29 = vrot.slane %v178_v21, 4 }
  0x59   :  { %v134_v30 = vrot.slane %v133_v22, 1  ;;  %v140_v31 = vadd.f32 %v139_v23, %v138_v15  ;;  %v147_v32 = vadd.f32 %v146_v24, %v145_v16  ;;  %v153_v33 = vrot.slane %v152_v25, 2 }
  0x5a   :  { %v162_v34 = vrot.slane %v161_v26, 1  ;;  %v167_v35 = vrot.slane %v166_v27, 2  ;;  %v174_v36 = vrot.slane %v173_v28, 2  ;;  %v180_v37 = vadd.f32 %v179_v29, %v178_v21 }
  0x5b   :  { %v135_v38 = vadd.f32 %v134_v30, %v133_v22  ;;  %v141_v40 = vrot.slane %v140_v31, 1  ;;  %v148_v41 = vrot.slane %v147_v32, 1  ;;  %v154_v42 = vadd.f32 %v153_v33, %v152_v25 }
  0x5c   :  { %v168_v43 = vadd.f32 %v167_v35, %v166_v27  ;;  %v175_v44 = vadd.f32 %v174_v36, %v173_v28  ;;  %v181_v45 = vrot.slane %v180_v37, 2  ;;  %v163_v50 = vadd.f32 %v162_v34, %v161_v26 }
  0x5d   :  { %v142_v46 = vadd.f32 %v141_v40, %v140_v31  ;;  %v149_v47 = vadd.f32 %v148_v41, %v147_v32  ;;  %v155_v48 = vrot.slane %v154_v42, 1 }
  0x5e   :  { %v169_v51 = vrot.slane %v168_v43, 1  ;;  %v176_v52 = vrot.slane %v175_v44, 1  ;;  %v182_v53 = vadd.f32 %v181_v45, %v180_v37 }
  0x5f   :  { %v156_v54 = vadd.f32 %v155_v48, %v154_v42  ;;  %v193_v55 = vcombine.low %v135_v38, %v142_v46 }
  0x60   :  { %v170_v56 = vadd.f32 %v169_v51, %v168_v43  ;;  %v177_v57 = vadd.f32 %v176_v52, %v175_v44  ;;  %v183_v58 = vrot.slane %v182_v53, 1 }
  0x61   :  { %v194_v59 = vcombine.low %v149_v47, %v156_v54  ;;  %v203_v60 = vrot.slane %v193_v55, %v202_v49 }
  0x62   :  { %v184_v62 = vadd.f32 %v183_v58, %v182_v53  ;;  %v195_v63 = vcombine.low %v163_v50, %v170_v56 }
  0x63   :  { %v210_v0 = vrot.slane %v194_v59, %v202_v49 }
  0x64   :  { %v196_v1 = vcombine.low %v177_v57, %v184_v62  ;;  %v217_v2 = vrot.slane %v195_v63, %v202_v49 }
  0x65   :  { %v225_v3 = vcombine.low %v203_v60, %v210_v0 }
  0x66   :  { %v224_v4 = vrot.slane %v196_v1, %v202_v49 }
  0x67   :  { %v233_v39 = vrot.slane %v225_v3, %v202_v49 }
  0x68   :  { %v226_v5 = vcombine.low %v217_v2, %v224_v4 }
  0x6a   :  { %v240_v61 = vrot.slane %v226_v5, %v202_v49 }
  0x6c   :  { %v241_v6 = vcombine.low %v233_v39, %v240_v61 }
  0x6e   :  { %243 = vst [vmem:[#allocation7] sm:$0xff] %v241_v6 }
  0x6f   :  { %332 = shalt.err (!%p329_p6)
}
  0x70   :  { %s333_s8 = scalar_lea.hbm %s419_s2, 128 }
  0x71   :  { %p334_p7 = scmp.ne.s32.totalorder %s419_s2, %s333_s8  ;;  %p337_p8 = scmp.lt.u32.totalorder %s333_s8, %s419_s2 }
  0x73   :  { %p339_p9 = pnand %p337_p8, %p334_p7 }
  0x75   :  { %342 = shalt.err (!%p339_p9)
}
  0x76   :  { %253 = dma.vmem_to_hbm [thread:$0]  %s251_s4, 128, %s419_s2, [#allocation4]  }
  0x77   :  { %347 = dma.done.wait [#allocation4], 128  }
  0x78   :  { %348 = vsyncadd [#allocation4], 4294967168 }
  0x79   :  { %257 = vsyncpa [#allocation3], 1 }
  0x7a   :  { %258 = vsyncpa [#allocation6], 1 }
  0x7b   :  { %259 = vsyncpa [#allocation4], 1 }

</bundles_post_ra>
